<compile_context>
chip_gen: v6e
topology: v6e:2x2x1
jax: 0.10.0
libtpu: 0.0.40
codegen_flags: <defaults>
</compile_context>

<pallas_src>
import jax
import jax.numpy as jnp
from jax.experimental import pallas as pl
from jax.experimental.pallas import tpu as pltpu


def _round_up(x, m):
    return (x + m - 1) // m * m


def _num_tensorcores():
    """Best-effort TensorCore count (v7x has 2; v5e/v6e have 1)."""
    try:
        info = pltpu.get_tpu_info()
        for name in ("num_tensorcores", "tensorcore_count", "num_cores",
                     "core_count", "num_tensor_cores"):
            n = getattr(info, name, None)
            if n is not None:
                n = int(n)
                if n > 0:
                    return n
    except Exception:
        pass
    return 1  # safe default: no forced grid split on single-TC chips


def _make_mlp_kernel(num_hidden, compute_dtype):
    """Kernel: x_ref, w_first_ref, w_hidden_refs..., w_last_ref, o_ref (all VMEM)."""

    def kernel(*refs):
        x_ref = refs[0]
        w_first_ref = refs[1]
        w_hidden_refs = refs[2:2 + num_hidden]
        w_last_ref = refs[2 + num_hidden]
        o_ref = refs[3 + num_hidden]

        # Layer 1: Linear(1 -> U). K=1 matmul == outer product -> VPU broadcast
        # multiply instead of an MXU pass.
        x = x_ref[...].astype(jnp.float32)                 # (bb, 1)
        w1 = w_first_ref[...].astype(jnp.float32)          # (1, U)
        h = jnp.maximum(x * w1, 0.0)                       # (bb, U)

        # Hidden layers: Linear(U -> U) + ReLU on the MXU. Operands cast to
        # compute_dtype (bf16 by default), accumulation always fp32.
        for w_ref in w_hidden_refs:
            h = jnp.dot(h.astype(compute_dtype), w_ref[...],
                        preferred_element_type=jnp.float32)
            h = jnp.maximum(h, 0.0)

        # Last layer: Linear(U -> 1). N=1 matmul would give a 1-lane MXU result;
        # VPU multiply + lane reduction instead.
        wl = w_last_ref[...].astype(jnp.float32)           # (1, U), pre-transposed
        out = jnp.sum(h * wl, axis=-1, keepdims=True)      # (bb, 1)
        o_ref[...] = out.astype(o_ref.dtype)

    return kernel


def ann_forward(x, weights, *, block_batch=2048, use_bf16=True, x_buffers=3):
    """Forward pass of `ANN` (bias-free MLP) as a single Pallas kernel.

    Args:
      x: (B, 1) float input.
      weights: list of (in_features, out_features) matrices (transpose of
               PyTorch nn.Linear.weight), matching Dense_1 .. Dense_depth.
      block_batch: batch tile size (rows per grid step); rounded to a multiple
                   of 8 and capped by the (padded) batch. Only split to >=2
                   grid steps when >=2 TensorCores are detected (v7x).
      use_bf16: bf16 hidden-matmul operands with fp32 accumulation (MXU is
                bf16-native on v5e/v6e/v7x). First/last layers stay f32.
                NOTE: bf16 quantization error compounds with depth; re-validate
                tolerance if depth/unit grow well beyond the defaults.
      x_buffers: pipeline depth for the tiny (bb, 1) input tile.
    Returns:
      (B, 1) float32 output.
    """
    B, in_dim = x.shape
    assert in_dim == 1, "ANN takes scalar features: x must be (B, 1)"
    num_layers = len(weights)
    assert num_layers >= 2
    unit = weights[0].shape[1]
    assert weights[0].shape == (1, unit)
    assert weights[-1].shape == (unit, 1)

    # ---- pad hidden width to a multiple of 128 (lane / MXU native width). ----
    # Exact because layers are bias-free and ReLU(0) == 0: padded rows/columns
    # stay identically zero. Do NOT pad beyond 128 for the 256-wide MXUs.
    U = max(128, _round_up(unit, 128))
    hidden_dtype = jnp.bfloat16 if use_bf16 else jnp.float32

    w_first = jnp.zeros((1, U), jnp.float32).at[:, :unit].set(
        weights[0].astype(jnp.float32))
    w_hidden = [
        jnp.zeros((U, U), hidden_dtype).at[:unit, :unit].set(w.astype(hidden_dtype))
        for w in weights[1:-1]
    ]
    # Last layer pre-transposed to a (1, U) row -> lane multiply + reduce.
    w_last = jnp.zeros((1, U), jnp.float32).at[:, :unit].set(
        weights[-1].astype(jnp.float32).T)

    # ---- batch tile / grid (pad batch so any B works). ----
    bb = max(8, _round_up(min(block_batch, _round_up(B, 8)), 8))
    if _num_tensorcores() >= 2 and _round_up(B, bb) // bb < 2 and bb > 8:
        # Only on multi-TC chips (v7x): ensure >= 2 grid steps so the
        # "parallel" batch axis can shard across both TensorCores.
        bb = max(8, _round_up((B + 1) // 2, 8))
    B_pad = _round_up(B, bb)
    x_pad = jnp.pad(x.astype(jnp.float32), ((0, B_pad - B), (0, 0)))

    num_hidden = num_layers - 2
    kernel = _make_mlp_kernel(num_hidden, hidden_dtype)

    # ---- explicit VMEM budget (weights*buffers + activations + I/O). ----
    hid_itemsize = jnp.dtype(hidden_dtype).itemsize
    weight_bytes = 2 * U * 4 + num_hidden * U * U * hid_itemsize      # single-buffered
    io_bytes = bb * 4 * (max(2, x_buffers) + 2)                       # x + o tiles
    act_bytes = 2 * bb * U * (4 + hid_itemsize)                       # f32 act + cast copy
    vmem_needed = weight_bytes + io_bytes + act_bytes
    # Generous margin; floor at 32 MiB (>= all default scoped limits), cap at
    # 56 MiB to stay safely inside v7x's 64 MiB physical VMEM.
    vmem_limit = int(min(max(2 * vmem_needed + (8 << 20), 32 << 20), 56 << 20))

    def build_call(with_pipeline_modes):
        if with_pipeline_modes:
            w_mode = dict(pipeline_mode=pl.Buffered(1))            # never re-fetched
            x_mode = dict(pipeline_mode=pl.Buffered(max(2, x_buffers)))
        else:
            w_mode, x_mode = {}, {}
        x_spec = pl.BlockSpec((bb, 1), lambda i: (i, 0), **x_mode)
        w_first_spec = pl.BlockSpec((1, U), lambda i: (0, 0), **w_mode)
        w_hidden_specs = [pl.BlockSpec((U, U), lambda i: (0, 0), **w_mode)
                          for _ in range(num_hidden)]
        w_last_spec = pl.BlockSpec((1, U), lambda i: (0, 0), **w_mode)
        o_spec = pl.BlockSpec((bb, 1), lambda i: (i, 0))
        return pl.pallas_call(
            kernel,
            out_shape=jax.ShapeDtypeStruct((B_pad, 1), jnp.float32),
            grid_spec=pltpu.PrefetchScalarGridSpec(
                num_scalar_prefetch=0,
                grid=(B_pad // bb,),
                in_specs=[x_spec, w_first_spec] + w_hidden_specs + [w_last_spec],
                out_specs=o_spec,
            ),
            compiler_params=pltpu.CompilerParams(
                dimension_semantics=("parallel",),
                vmem_limit_bytes=vmem_limit,
            ),
        )

    operands = (x_pad, w_first, *w_hidden, w_last)
    try:
        out = build_call(True)(*operands)
    except Exception:
        # TODO(synk): pl.Buffered pipeline_mode not supported by this JAX build;
        # fall back to default double-buffering (identical results, more VMEM).
        out = build_call(False)(*operands)

    return out[:B]


def init_ann_params(key, depth=4, unit=70):
    """Deterministic parameter init. Returns list of (in, out) matrices."""
    dims = [1] + [unit] * (depth - 1) + [1]
    weights = []
    for li in range(depth):
        key, sub = jax.random.split(key)
        fan_in = dims[li]
        bound = 1.0 / jnp.sqrt(jnp.float32(fan_in))   # matches nn.Linear default scale
        w = jax.random.uniform(
            sub, (dims[li], dims[li + 1]), jnp.float32, minval=-bound, maxval=bound
        )
        weights.append(w)
    return weights


def ann_reference(x, weights):
    """Pure-JAX reference for correctness checking."""
    h = x
    for i, w in enumerate(weights):
        h = h @ w
        if i < len(weights) - 1:
            h = jnp.maximum(h, 0.0)
    return h


if __name__ == "__main__":
    depth, unit = 4, 70          # module defaults
    batch = 64                   # small synthetic batch

    key = jax.random.PRNGKey(0)
    key, xk = jax.random.split(key)
    x = jax.random.normal(xk, (batch, 1), jnp.float32)

    weights = init_ann_params(key, depth=depth, unit=unit)
    ref = ann_reference(x, weights)

    # fp32 path: padding + VPU first/last layers are bit-equivalent -> tight tol.
    out_f32 = jax.block_until_ready(ann_forward(x, weights, use_bf16=False))
    assert out_f32.shape == (batch, 1)
    assert jnp.allclose(out_f32, ref, atol=1e-5, rtol=1e-5), "fp32 mismatch vs reference"

    # Default path: bf16 hidden matmuls (fp32 accumulation) on the MXU.
    out = jax.block_until_ready(ann_forward(x, weights))
    assert out.shape == (batch, 1)
    assert jnp.allclose(out, ref, atol=5e-2, rtol=5e-2), "bf16 mismatch vs reference"

    print("KERNEL_OK")
</pallas_src>

<mosaic_0001>
module attributes {stable_mosaic.version = 11 : i64} {
  func.func @kernel(%arg0: i32, %arg1: memref<64x1xf32, #tpu.memory_space<vmem>>, %arg2: memref<1x128xf32, #tpu.memory_space<vmem>>, %arg3: memref<128x128xf32, #tpu.memory_space<vmem>>, %arg4: memref<128x128xf32, #tpu.memory_space<vmem>>, %arg5: memref<1x128xf32, #tpu.memory_space<vmem>>, %arg6: memref<64x1xf32, #tpu.memory_space<vmem>>) attributes {dimension_semantics = [#tpu.dimension_semantics<parallel>], iteration_bounds = array<i64: 1>, scalar_prefetch = 0 : i64, scratch_operands = 0 : i64, tpu.core_type = #tpu.core_type<tc>, window_params = [{transform_indices = @transform_0, window_bounds = array<i64: 64, 1>}, {pipeline_mode = #tpu.pipeline_mode<synchronous>, transform_indices = @transform_1, window_bounds = array<i64: 1, 128>}, {pipeline_mode = #tpu.pipeline_mode<synchronous>, transform_indices = @transform_2, window_bounds = array<i64: 128, 128>}, {pipeline_mode = #tpu.pipeline_mode<synchronous>, transform_indices = @transform_3, window_bounds = array<i64: 128, 128>}, {pipeline_mode = #tpu.pipeline_mode<synchronous>, transform_indices = @transform_4, window_bounds = array<i64: 1, 128>}, {transform_indices = @transform_5, window_bounds = array<i64: 64, 1>}]} {
    %c0 = arith.constant 0 : index
    %c0_0 = arith.constant 0 : index
    %0 = vector.load %arg1[%c0, %c0_0] : memref<64x1xf32, #tpu.memory_space<vmem>>, vector<64x1xf32>
    %c0_1 = arith.constant 0 : index
    %c0_2 = arith.constant 0 : index
    %1 = vector.load %arg2[%c0_1, %c0_2] : memref<1x128xf32, #tpu.memory_space<vmem>>, vector<1x128xf32>
    %2 = vector.broadcast %0 : vector<64x1xf32> to vector<64x128xf32>
    %3 = vector.broadcast %1 : vector<1x128xf32> to vector<64x128xf32>
    %4 = arith.mulf %2, %3 : vector<64x128xf32>
    %cst = arith.constant 0.000000e+00 : f32
    %5 = vector.broadcast %cst : f32 to vector<64x128xf32>
    %6 = arith.maximumf %4, %5 : vector<64x128xf32>
    %c0_3 = arith.constant 0 : index
    %c0_4 = arith.constant 0 : index
    %7 = vector.load %arg3[%c0_3, %c0_4] : memref<128x128xf32, #tpu.memory_space<vmem>>, vector<128x128xf32>
    %cst_5 = arith.constant dense<0.000000e+00> : vector<64x128xf32>
    %8 = tpu.matmul %6, %7, %cst_5 {dimension_numbers = #tpu.dot_dimension_numbers<[1], [0], [0], [1], [0, 0, 1, 1], [], []>} : vector<64x128xf32>, vector<128x128xf32>, vector<64x128xf32> -> vector<64x128xf32>
    %cst_6 = arith.constant 0.000000e+00 : f32
    %9 = vector.broadcast %cst_6 : f32 to vector<64x128xf32>
    %10 = arith.maximumf %8, %9 : vector<64x128xf32>
    %c0_7 = arith.constant 0 : index
    %c0_8 = arith.constant 0 : index
    %11 = vector.load %arg4[%c0_7, %c0_8] : memref<128x128xf32, #tpu.memory_space<vmem>>, vector<128x128xf32>
    %cst_9 = arith.constant dense<0.000000e+00> : vector<64x128xf32>
    %12 = tpu.matmul %10, %11, %cst_9 {dimension_numbers = #tpu.dot_dimension_numbers<[1], [0], [0], [1], [0, 0, 1, 1], [], []>} : vector<64x128xf32>, vector<128x128xf32>, vector<64x128xf32> -> vector<64x128xf32>
    %cst_10 = arith.constant 0.000000e+00 : f32
    %13 = vector.broadcast %cst_10 : f32 to vector<64x128xf32>
    %14 = arith.maximumf %12, %13 : vector<64x128xf32>
    %c0_11 = arith.constant 0 : index
    %c0_12 = arith.constant 0 : index
    %15 = vector.load %arg5[%c0_11, %c0_12] : memref<1x128xf32, #tpu.memory_space<vmem>>, vector<1x128xf32>
    %16 = vector.broadcast %15 : vector<1x128xf32> to vector<64x128xf32>
    %17 = arith.mulf %14, %16 : vector<64x128xf32>
    %cst_13 = arith.constant dense<0.000000e+00> : vector<64xf32>
    %18 = vector.multi_reduction <add>, %17, %cst_13 [1] : vector<64x128xf32> to vector<64xf32>
    %19 = vector.shape_cast %18 : vector<64xf32> to vector<64x1xf32>
    %c0_14 = arith.constant 0 : index
    %c0_15 = arith.constant 0 : index
    %20 = vector.load %arg6[%c0_14, %c0_15] : memref<64x1xf32, #tpu.memory_space<vmem>>, vector<64x1xf32>
    tpu.vector_store %arg6[%c0_14, %c0_15], %19 {strides = array<i32>} : memref<64x1xf32, #tpu.memory_space<vmem>>, vector<64x1xf32>,
    return
  }
  func.func @transform_0(%arg0: i32) -> (i32, i32) {
    %c0_i32 = arith.constant 0 : i32
    %c0_i32_0 = arith.constant 0 : i32
    return %arg0, %c0_i32 : i32, i32
  }
  func.func @transform_1(%arg0: i32) -> (i32, i32) {
    %c0_i32 = arith.constant 0 : i32
    %c0_i32_0 = arith.constant 0 : i32
    %c0_i32_1 = arith.constant 0 : i32
    return %c0_i32, %c0_i32_0 : i32, i32
  }
  func.func @transform_2(%arg0: i32) -> (i32, i32) {
    %c0_i32 = arith.constant 0 : i32
    %c0_i32_0 = arith.constant 0 : i32
    %c0_i32_1 = arith.constant 0 : i32
    return %c0_i32, %c0_i32_0 : i32, i32
  }
  func.func @transform_3(%arg0: i32) -> (i32, i32) {
    %c0_i32 = arith.constant 0 : i32
    %c0_i32_0 = arith.constant 0 : i32
    %c0_i32_1 = arith.constant 0 : i32
    return %c0_i32, %c0_i32_0 : i32, i32
  }
  func.func @transform_4(%arg0: i32) -> (i32, i32) {
    %c0_i32 = arith.constant 0 : i32
    %c0_i32_0 = arith.constant 0 : i32
    %c0_i32_1 = arith.constant 0 : i32
    return %c0_i32, %c0_i32_0 : i32, i32
  }
  func.func @transform_5(%arg0: i32) -> (i32, i32) {
    %c0_i32 = arith.constant 0 : i32
    %c0_i32_0 = arith.constant 0 : i32
    return %arg0, %c0_i32 : i32, i32
  }
}

</mosaic_0001>

<bundles_post_ra>
// kernel: tpu_custom_call.1
= control target key start
LH: loop header
LB: loop body
LE: loop exit
PB: predicated region body
PF: predicated region fallthrough
CT: control target
= control target key end

     0   :  { %10 = vsyncpa [#allocation3], 0  ;;  %s715_s0 = inlined_call_operand.vmem [shape: f32[64,1], index: 0, kind: input, shape index: {}]   ;;  %s716_s1 = inlined_call_operand.vmem [shape: f32[1,128], index: 1, kind: input, shape index: {}]   ;;  %s717_s2 = inlined_call_operand.hbm [shape: f32[128,128], index: 2, kind: input, shape index: {}]   ;;  %s718_s3 = inlined_call_operand.hbm [shape: f32[128,128], index: 3, kind: input, shape index: {}]   ;;  %s719_s4 = inlined_call_operand.vmem [shape: f32[1,128], index: 4, kind: input, shape index: {}]   ;;  %s720_s5 = inlined_call_operand.vmem [shape: f32[64,1], index: 5, kind: output, shape index: {}]  }
   0x1   :  { %11 = vsyncpa [#allocation5], 0  ;;  %s612_s18 = smov [#allocation2]  }
   0x2   :  { %s21_s19 = sshll.u32 %s612_s18, 4  ;;  %s22_s19 = int_to_ptr.vmem [resolvable:$true] %s21_s19 }
   0x3   :  { %s576_s20 = scalar_lea.vmem %s22_s19, 2048  ;;  %p581_p1 = scmp.lt.s32.totalorder %s22_s19, %s22_s19 }
   0x4   :  { %p577_p0 = scmp.ne.s32.totalorder %s22_s19, %s576_s20  ;;  %p582_p2 = scmp.lt.s32.totalorder %s576_s20, %s576_s20 }
   0x6   :  { %p583_p3 = por %p582_p2, %p581_p1 }
   0x8   :  { %p584_p4 = pnand %p583_p3, %p577_p0 }
   0xa   :  { %587 = shalt.err (!%p584_p4)
}
   0xb   :  { %s613_s21 = smov 128   ;;  %s614_s22 = smov 8  }
   0xc   :  { %27 = dma.hbm_to_vmem [thread:$0]  %s717_s2, 2048, %s22_s19, [#allocation3], %s613_s21, %s613_s21, %s614_s22  }
   0xd   :  { %s615_s25 = smov [#allocation4]  }
   0xe   :  { %s33_s26 = sshll.u32 %s615_s25, 4  ;;  %s34_s26 = int_to_ptr.vmem [resolvable:$true] %s33_s26 }
   0xf   :  { %s596_s27 = scalar_lea.vmem %s34_s26, 2048  ;;  %p601_p6 = scmp.lt.s32.totalorder %s34_s26, %s34_s26 }
  0x10   :  { %p597_p5 = scmp.ne.s32.totalorder %s34_s26, %s596_s27  ;;  %p602_p7 = scmp.lt.s32.totalorder %s596_s27, %s596_s27 }
  0x12   :  { %p603_p8 = por %p602_p7, %p601_p6 }
  0x14   :  { %p604_p9 = pnand %p603_p8, %p597_p5 }
  0x16   :  { %607 = shalt.err (!%p604_p9)
}
  0x17   :  { %39 = dma.hbm_to_vmem [thread:$0]  %s718_s3, 2048, %s34_s26, [#allocation5], %s613_s21, %s613_s21, %s614_s22  }
  0x18   :  { %608 = dma.done.wait [#allocation3], 2048  }
  0x19   :  { %609 = vsyncadd [#allocation3], 4294965248 }
  0x1a   :  { %610 = dma.done.wait [#allocation5], 2048  }
  0x1b   :  { %611 = vsyncadd [#allocation5], 4294965248  ;;  %v616_v0 = vmov 0   ;;  %v50_v1 = vld [vmem:[%s715_s0 + $0x10] sm:$0xff]  ;;  %v48_v2 = vld [vmem:[%s715_s0] sm:$0xff]  ;;  %vm408_vm0 = vcmask 7168  }
  0x1c   :  { %567 = vset.pattern.permute.xlu1 %v616_v0  ;;  %566 = vset.pattern.permute.xlu0 %v616_v0  ;;  %v51_v3 = vld [vmem:[%s715_s0 + $0x18] sm:$0xff]  ;;  %v49_v4 = vld [vmem:[%s715_s0 + $0x8] sm:$0xff]  ;;  %v133_v6 = vld [vmem:[#allocation2 + $0x70] sm:$0xff] }
  0x1d   :  { %69 = vperm.xlu1 %567, %v50_v1   ;;  %59 = vperm.xlu0 %566, %v48_v2   ;;  %v134_v5 = vld [vmem:[#allocation2 + $0x78] sm:$0xff]  ;;  %v132_v7 = vld [vmem:[#allocation2 + $0x68] sm:$0xff]  ;;  %v52_v9 = vld [vmem:[%s715_s0 + $0x20] sm:$0xff] }
  0x1e   :  { %473 = vmatprep.subr.mxu0 %v134_v5  ;;  %v53_v8 = vld [vmem:[%s715_s0 + $0x28] sm:$0xff]  ;;  %v131_v10 = vld [vmem:[#allocation2 + $0x60] sm:$0xff]  ;;  %v55_v11 = vld [vmem:[%s715_s0 + $0x38] sm:$0xff] }
  0x1f   :  { %474 = vmatpush3.msra.mxu0 %v134_v5  ;;  %v54_v12 = vld [vmem:[%s715_s0 + $0x30] sm:$0xff]  ;;  %v130_v13 = vld [vmem:[#allocation2 + $0x58] sm:$0xff]  ;;  %v128_v15 = vld [vmem:[#allocation2 + $0x48] sm:$0xff] }
  0x20   :  { %475 = vmatprep.subr.mxu0 %v133_v6  ;;  %v129_v14 = vld [vmem:[#allocation2 + $0x50] sm:$0xff]  ;;  %v127_v16 = vld [vmem:[#allocation2 + $0x40] sm:$0xff]  ;;  %v263_v17 = vld [vmem:[#allocation4 + $0x78] sm:$0xff] }
  0x21   :  { %74 = vperm.xlu1 %567, %v51_v3   ;;  %64 = vperm.xlu0 %566, %v49_v4   ;;  %v262_v18 = vld [vmem:[#allocation4 + $0x70] sm:$0xff]  ;;  %v126_v19 = vld [vmem:[#allocation2 + $0x38] sm:$0xff]  ;;  %v261_v20 = vld [vmem:[#allocation4 + $0x68] sm:$0xff] }
  0x22   :  { %476 = vmatpush3.msra.mxu0 %v133_v6  ;;  %517 = vmatprep.subr.mxu1 %v263_v17  ;;  %v125_v21 = vld [vmem:[#allocation2 + $0x30] sm:$0xff]  ;;  %v260_v22 = vld [vmem:[#allocation4 + $0x60] sm:$0xff]  ;;  %v124_v23 = vld [vmem:[#allocation2 + $0x28] sm:$0xff] }
  0x23   :  { %477 = vmatprep.subr.mxu0 %v132_v7  ;;  %518 = vmatpush3.msra.mxu1 %v263_v17  ;;  %v259_v24 = vld [vmem:[#allocation4 + $0x58] sm:$0xff]  ;;  %v123_v25 = vld [vmem:[#allocation2 + $0x20] sm:$0xff]  ;;  %v258_v26 = vld [vmem:[#allocation4 + $0x50] sm:$0xff] }
  0x24   :  { %478 = vmatpush3.msra.mxu0 %v132_v7  ;;  %519 = vmatprep.subr.mxu1 %v262_v18  ;;  %v122_v27 = vld [vmem:[#allocation2 + $0x18] sm:$0xff]  ;;  %v257_v28 = vld [vmem:[#allocation4 + $0x48] sm:$0xff]  ;;  %v121_v29 = vld [vmem:[#allocation2 + $0x10] sm:$0xff] }
  0x25   :  { %84 = vperm.xlu1 %567, %v53_v8   ;;  %79 = vperm.xlu0 %566, %v52_v9   ;;  %v256_v30 = vld [vmem:[#allocation4 + $0x40] sm:$0xff]  ;;  %v120_v31 = vld [vmem:[#allocation2 + $0x8] sm:$0xff]  ;;  %v255_v32 = vld [vmem:[#allocation4 + $0x38] sm:$0xff] }
  0x26   :  { %479 = vmatprep.subr.mxu0 %v131_v10  ;;  %520 = vmatpush3.msra.mxu1 %v262_v18  ;;  %v119_v33 = vld [vmem:[#allocation2] sm:$0xff]  ;;  %v254_v34 = vld [vmem:[#allocation4 + $0x30] sm:$0xff]  ;;  %v253_v35 = vld [vmem:[#allocation4 + $0x28] sm:$0xff] }
  0x27   :  { %480 = vmatpush3.msra.mxu0 %v131_v10  ;;  %521 = vmatprep.subr.mxu1 %v261_v20  ;;  %v252_v36 = vld [vmem:[#allocation4 + $0x20] sm:$0xff]  ;;  %v251_v37 = vld [vmem:[#allocation4 + $0x18] sm:$0xff]  ;;  %v250_v63 = vld [vmem:[#allocation4 + $0x10] sm:$0xff] }
  0x28   :  { %481 = vmatprep.subr.mxu0 %v130_v13  ;;  %522 = vmatpush3.msra.mxu1 %v261_v20  ;;  %v423_v38 = vld [vmem:[%s716_s1] ss:$0 sm:$0xff]  ;;  %v249_v0 = vld [vmem:[#allocation4 + $0x8] sm:$0xff] }
  0x29   :  { %94 = vperm.xlu1 %567, %v55_v11   ;;  %89 = vperm.xlu0 %566, %v54_v12   ;;  %v248_v1 = vld [vmem:[#allocation4] sm:$0xff] }
  0x2a   :  { %482 = vmatpush3.msra.mxu0 %v130_v13  ;;  %523 = vmatprep.subr.mxu1 %v260_v22 }
  0x2b   :  { %483 = vmatprep.subr.mxu0 %v129_v14  ;;  %524 = vmatpush3.msra.mxu1 %v260_v22 }
  0x2c   :  { %484 = vmatpush3.msra.mxu0 %v129_v14  ;;  %525 = vmatprep.subr.mxu1 %v259_v24 }
  0x2d   :  { %485 = vmatprep.subr.mxu0 %v128_v15  ;;  %526 = vmatpush3.msra.mxu1 %v259_v24 }
  0x2e   :  { %486 = vmatpush3.msra.mxu0 %v128_v15  ;;  %527 = vmatprep.subr.mxu1 %v258_v26 }
  0x2f   :  { %487 = vmatprep.subr.mxu0 %v127_v16  ;;  %528 = vmatpush3.msra.mxu1 %v258_v26 }
  0x30   :  { %488 = vmatpush3.msra.mxu0 %v127_v16  ;;  %529 = vmatprep.subr.mxu1 %v257_v28 }
  0x31   :  { %489 = vmatprep.subr.mxu0 %v126_v19  ;;  %530 = vmatpush3.msra.mxu1 %v257_v28 }
  0x32   :  { %490 = vmatpush3.msra.mxu0 %v126_v19  ;;  %531 = vmatprep.subr.mxu1 %v256_v30  ;;  %v424_v19 = vld [vmem:[%s719_s4] ss:$0 sm:$0xff] }
  0x33   :  { %491 = vmatprep.subr.mxu0 %v125_v21  ;;  %532 = vmatpush3.msra.mxu1 %v256_v30 }
  0x34   :  { %492 = vmatpush3.msra.mxu0 %v125_v21  ;;  %533 = vmatprep.subr.mxu1 %v255_v32 }
  0x35   :  { %493 = vmatprep.subr.mxu0 %v124_v23  ;;  %534 = vmatpush3.msra.mxu1 %v255_v32 }
  0x36   :  { %494 = vmatpush3.msra.mxu0 %v124_v23  ;;  %535 = vmatprep.subr.mxu1 %v254_v34 }
  0x37   :  { %495 = vmatprep.subr.mxu0 %v123_v25  ;;  %536 = vmatpush3.msra.mxu1 %v254_v34 }
  0x38   :  { %496 = vmatpush3.msra.mxu0 %v123_v25  ;;  %537 = vmatprep.subr.mxu1 %v253_v35 }
  0x39   :  { %497 = vmatprep.subr.mxu0 %v122_v27  ;;  %538 = vmatpush3.msra.mxu1 %v253_v35 }
  0x3a   :  { %498 = vmatpush3.msra.mxu0 %v122_v27  ;;  %539 = vmatprep.subr.mxu1 %v252_v36 }
  0x3b   :  { %499 = vmatprep.subr.mxu0 %v121_v29  ;;  %540 = vmatpush3.msra.mxu1 %v252_v36 }
  0x3c   :  { %500 = vmatpush3.msra.mxu0 %v121_v29  ;;  %541 = vmatprep.subr.mxu1 %v251_v37 }
  0x3d   :  { %501 = vmatprep.subr.mxu0 %v120_v31  ;;  %542 = vmatpush3.msra.mxu1 %v251_v37 }
  0x3e   :  { %502 = vmatpush3.msra.mxu0 %v120_v31  ;;  %543 = vmatprep.subr.mxu1 %v250_v63 }
  0x3f   :  { %503 = vmatprep.subr.mxu0 %v119_v33  ;;  %544 = vmatpush3.msra.mxu1 %v250_v63 }
  0x40   :  { %504 = vmatpush3.msra.mxu0 %v119_v33  ;;  %545 = vmatprep.subr.mxu1 %v249_v0 }
  0x41   :  { %546 = vmatpush3.msra.mxu1 %v249_v0 }
  0x42   :  { %547 = vmatprep.subr.mxu1 %v248_v1 }
  0x43   :  { %548 = vmatpush3.msra.mxu1 %v248_v1 }
  0x98   :  { %v70_v39 = vpop.permute.xlu1 %69  ;;  %v60_v40 = vpop.permute.xlu0 %59 }
  0x99   :  { %v103_v41 = vmul.f32 %v423_v38, %v60_v40  ;;  %v105_v42 = vmul.f32 %v423_v38, %v70_v39 }
  0x9b   :  { %v111_v43 = vmax.f32 %v103_v41, 0.0  ;;  %v113_v47 = vmax.f32 %v105_v42, 0.0 }
  0x9c   :  { %v75_v44 = vpop.permute.xlu1 %74  ;;  %v65_v45 = vpop.permute.xlu0 %64 }
  0x9d   :  { %v104_v46 = vmul.f32 %v423_v38, %v65_v45  ;;  %505 = vmatprep.mubr.f32.mxu0 %v111_v43  ;;  %v106_v48 = vmul.f32 %v423_v38, %v75_v44 }
  0x9f   :  { %v112_v49 = vmax.f32 %v104_v46, 0.0  ;;  %v114_v53 = vmax.f32 %v106_v48, 0.0 }
  0xa0   :  { %v85_v50 = vpop.permute.xlu1 %84  ;;  %v80_v51 = vpop.permute.xlu0 %79 }
  0xa1   :  { %v107_v52 = vmul.f32 %v423_v38, %v80_v51  ;;  %506 = vmatmul.mubr.f32.vlgmr.msra.gmra.mxu0 %v112_v49  ;;  %v108_v54 = vmul.f32 %v423_v38, %v85_v50 }
  0xa2   :  { %508 = vmatprep.mubr.f32.mxu0 %v113_v47 }
  0xa3   :  { %v115_v55 = vmax.f32 %v107_v52, 0.0  ;;  %v116_v59 = vmax.f32 %v108_v54, 0.0 }
  0xa4   :  { %v95_v56 = vpop.permute.xlu1 %94  ;;  %v90_v57 = vpop.permute.xlu0 %89 }
  0xa5   :  { %v109_v58 = vmul.f32 %v423_v38, %v90_v57  ;;  %509 = vmatmul.mubr.f32.gmra.mxu0 %v114_v53  ;;  %v110_v60 = vmul.f32 %v423_v38, %v95_v56 }
  0xa6   :  { %511 = vmatprep.mubr.f32.mxu0 %v115_v55 }
  0xa7   :  { %v117_v61 = vmax.f32 %v109_v58, 0.0  ;;  %v118_v62 = vmax.f32 %v110_v60, 0.0 }
  0xa9   :  { %512 = vmatmul.mubr.f32.gmra.mxu0 %v116_v59 }
  0xaa   :  { %514 = vmatprep.mubr.f32.mxu0 %v117_v61 }
  0xad   :  { %515 = vmatmul.mubr.f32.gmra.mxu0 %v118_v62 }
 0x161   :  { %v507_v2 = vpop.f32.mrf.mxu0 }
 0x162   :  { %v241_v5 = vmax.f32 %v507_v2, 0.0 }
 0x163   :  { %v201_v3 = vpop.f32.mrf.mxu0 }
 0x164   :  { %v240_v4 = vmax.f32 %v201_v3, 0.0 }
 0x165   :  { %v510_v6 = vpop.f32.mrf.mxu0 }
 0x166   :  { %549 = vmatprep.mubr.f32.mxu1 %v240_v4  ;;  %v243_v9 = vmax.f32 %v510_v6, 0.0 }
 0x167   :  { %v211_v7 = vpop.f32.mrf.mxu0  ;;  %550 = vmatmul.mubr.f32.vlgmr.msra.gmra.mxu1 %v241_v5 }
 0x168   :  { %v242_v8 = vmax.f32 %v211_v7, 0.0 }
 0x169   :  { %v513_v10 = vpop.f32.mrf.mxu0 }
 0x16a   :  { %552 = vmatprep.mubr.f32.mxu1 %v242_v8  ;;  %v245_v13 = vmax.f32 %v513_v10, 0.0 }
 0x16b   :  { %v221_v11 = vpop.f32.mrf.mxu0  ;;  %553 = vmatmul.mubr.f32.gmra.mxu1 %v243_v9 }
 0x16c   :  { %v244_v12 = vmax.f32 %v221_v11, 0.0 }
 0x16d   :  { %v516_v14 = vpop.f32.mrf.mxu0 }
 0x16e   :  { %555 = vmatprep.mubr.f32.mxu1 %v244_v12  ;;  %v247_v17 = vmax.f32 %v516_v14, 0.0 }
 0x16f   :  { %v231_v15 = vpop.f32.mrf.mxu0  ;;  %556 = vmatmul.mubr.f32.gmra.mxu1 %v245_v13 }
 0x170   :  { %v246_v16 = vmax.f32 %v231_v15, 0.0 }
 0x172   :  { %558 = vmatprep.mubr.f32.mxu1 %v246_v16 }
 0x173   :  { %559 = vmatmul.mubr.f32.gmra.mxu1 %v247_v17 }
 0x227   :  { %v551_v18 = vpop.f32.mrf.mxu1 }
 0x228   :  { %v370_v20 = vmax.f32 %v551_v18, 0.0 }
 0x229   :  { %v330_v21 = vpop.f32.mrf.mxu1 }
 0x22a   :  { %v369_v22 = vmax.f32 %v330_v21, 0.0  ;;  %v385_v23 = vmul.f32 %v424_v19, %v370_v20 }
 0x22b   :  { %v554_v24 = vpop.f32.mrf.mxu1 }
 0x22c   :  { %v372_v25 = vmax.f32 %v554_v24, 0.0  ;;  %394 = vadd.xlane.f32.xlu1 %v385_v23  ;;  %v384_v26 = vmul.f32 %v424_v19, %v369_v22 }
 0x22d   :  { %v340_v27 = vpop.f32.mrf.mxu1 }
 0x22e   :  { %392 = vadd.xlane.f32.xlu0 %v384_v26  ;;  %v371_v29 = vmax.f32 %v340_v27, 0.0  ;;  %v387_v30 = vmul.f32 %v424_v19, %v372_v25 }
 0x22f   :  { %v557_v28 = vpop.f32.mrf.mxu1 }
 0x230   :  { %v374_v34 = vmax.f32 %v557_v28, 0.0  ;;  %v386_v35 = vmul.f32 %v424_v19, %v371_v29 }
 0x231   :  { %v350_v31 = vpop.f32.mrf.mxu1 }
 0x232   :  { %v373_v32 = vmax.f32 %v350_v31, 0.0  ;;  %398 = vadd.xlane.f32.xlu0 %v387_v30  ;;  %v389_v40 = vmul.f32 %v424_v19, %v374_v34 }
 0x233   :  { %v560_v33 = vpop.f32.mrf.mxu1 }
 0x234   :  { %v388_v36 = vmul.f32 %v424_v19, %v373_v32  ;;  %v376_v39 = vmax.f32 %v560_v33, 0.0 }
 0x235   :  { %v360_v37 = vpop.f32.mrf.mxu1 }
 0x236   :  { %v375_v38 = vmax.f32 %v360_v37, 0.0  ;;  %396 = vadd.xlane.f32.xlu0 %v386_v35  ;;  %400 = vadd.xlane.f32.xlu1 %v388_v36  ;;  %v391_v42 = vmul.f32 %v424_v19, %v376_v39 }
 0x238   :  { %v390_v41 = vmul.f32 %v424_v19, %v375_v38 }
 0x23a   :  { %402 = vadd.xlane.f32.xlu0 %v389_v40  ;;  %404 = vadd.xlane.f32.xlu1 %v390_v41 }
 0x23e   :  { %406 = vadd.xlane.f32.xlu0 %v391_v42 }
 0x2b5   :  { %v395_v43 = vpop.xlane.xlu1 %394 }
 0x2b6   :  { %410 = vst.msk [vmem:[%s720_s5 + $0x8] sm:$0xff] %vm408_vm0, %v395_v43 }
 0x2b7   :  { %v393_v44 = vpop.xlane.xlu0 %392 }
 0x2b8   :  { %409 = vst.msk [vmem:[%s720_s5] sm:$0xff] %vm408_vm0, %v393_v44 }
 0x2bb   :  { %v399_v45 = vpop.xlane.xlu0 %398 }
 0x2bc   :  { %412 = vst.msk [vmem:[%s720_s5 + $0x18] sm:$0xff] %vm408_vm0, %v399_v45 }
 0x2bf   :  { %v401_v46 = vpop.xlane.xlu1 %400  ;;  %v397_v47 = vpop.xlane.xlu0 %396 }
 0x2c0   :  { %413 = vst.msk [vmem:[%s720_s5 + $0x20] sm:$0xff] %vm408_vm0, %v401_v46  ;;  %411 = vst.msk [vmem:[%s720_s5 + $0x10] sm:$0xff] %vm408_vm0, %v397_v47 }
 0x2c3   :  { %v405_v48 = vpop.xlane.xlu1 %404  ;;  %v403_v49 = vpop.xlane.xlu0 %402 }
 0x2c4   :  { %415 = vst.msk [vmem:[%s720_s5 + $0x30] sm:$0xff] %vm408_vm0, %v405_v48  ;;  %414 = vst.msk [vmem:[%s720_s5 + $0x28] sm:$0xff] %vm408_vm0, %v403_v49 }
 0x2c7   :  { %v407_v50 = vpop.xlane.xlu0 %406 }
 0x2c8   :  { %416 = vst.msk [vmem:[%s720_s5 + $0x38] sm:$0xff] %vm408_vm0, %v407_v50 }
 0x2c9   :  { %421 = vsyncpa [#allocation3], 1 }
 0x2ca   :  { %422 = vsyncpa [#allocation5], 1 }

</bundles_post_ra>
